<compile_context>
chip_gen: v7x
topology: tpu7x:2x2x1
jax: 0.10.0
libtpu: 0.0.40
codegen_flags: <defaults>
</compile_context>

<pallas_src>
import math

import jax
import jax.numpy as jnp
from jax import lax
from jax.experimental import pallas as pl
from jax.experimental.pallas import tpu as pltpu

_EPS2 = 1e-24  # torch F.normalize: denom = max(||v||, 1e-12) -> rsqrt(max(ss, 1e-24))


# ---------------------------------------------------------------------------
# Kernel A: per-user reduction of the prototype table, U_TILE users per step.
#   M[u] = sum_p normalize(out_proto[u, p])
# ---------------------------------------------------------------------------
def _proto_reduce_kernel(proto_ref, m_ref):
    pr = proto_ref[...]                                                  # (UT, P, D)
    inv = lax.rsqrt(jnp.maximum(jnp.sum(pr * pr, axis=-1, keepdims=True), _EPS2))
    m_ref[...] = jnp.sum(pr * inv, axis=1)                               # (UT, D)


def _normalized_transform(x_ref, w_ref, b_ref):
    """h^T = W @ x^T + b, then F.normalize per sample (samples on lanes)."""
    # The x transpose is absorbed into the MXU operand feed: contract dim 1 of
    # W (PyTorch Linear layout) with dim 1 of the (NB, D) x tile -> (D, NB).
    h = lax.dot_general(
        w_ref[...], x_ref[...].astype(w_ref.dtype),
        (((1,), (1,)), ((), ())),
        preferred_element_type=jnp.float32) + b_ref[...]                 # (D, NB) f32
    inv = lax.rsqrt(jnp.maximum(jnp.sum(h * h, axis=0, keepdims=True), _EPS2))
    return h * inv                                                       # (D, NB)


# ---------------------------------------------------------------------------
# Kernel B (small num_users): M VMEM-resident, gather via one-hot MXU matmul.
# ---------------------------------------------------------------------------
def _score_kernel_onehot(x_ref, w_ref, b_ref, uidx_ref, m_ref, out_ref):
    z = _normalized_transform(x_ref, w_ref, b_ref)                       # (D, NB)
    num_users, nb = m_ref.shape[0], out_ref.shape[1]
    u = uidx_ref[...]                                                    # (1, NB) i32
    onehot = (lax.broadcasted_iota(jnp.int32, (num_users, nb), 0) == u
              ).astype(jnp.float32)                                      # (U, NB)
    a = lax.dot_general(m_ref[...], onehot, (((0,), (0,)), ((), ())),
                        preferred_element_type=jnp.float32)              # (D, NB)
    out_ref[...] = jnp.sum(z * a, axis=0, keepdims=True)                 # (1, NB)


# ---------------------------------------------------------------------------
# Kernel B (large num_users): anchors M[uidx] gathered by XLA in the wrapper
# and streamed per tile in the (D, NB) orientation -- O(NB*D) bytes per tile,
# no VMEM-resident M, no O(num_users) per-tile work.
# ---------------------------------------------------------------------------
def _score_kernel_streamed(x_ref, w_ref, b_ref, a_ref, out_ref):
    z = _normalized_transform(x_ref, w_ref, b_ref)                       # (D, NB)
    out_ref[...] = jnp.sum(z * a_ref[...], axis=0, keepdims=True)        # (1, NB)


def _pick_nb(n):
    # Wide tiles amortize the ~0.35us/step pipeline overhead, keep the (1, NB)
    # stores dense and fill the 256-wide MXU N on v6e/v7x, but keep >= 2 tiles
    # when possible so v7x can shard the "parallel" grid axis over 2 TCs.
    target = max(128, min(512, pl.cdiv(n, 2)))
    return pl.cdiv(target, 128) * 128


def user_memory_forward(uidx, x, w, bias, out_proto, *, nb=None,
                        mxu_dtype=jnp.bfloat16, gather="auto"):
    """Pallas implementation of UserMemory.forward (com_memory=False).

    uidx:      (N,)   int   user indices
    x:         (N, D) f32   embeddings
    w:         (D, D) f32   trans Linear weight (PyTorch layout, h = x @ w.T + b)
    bias:      (D,)   f32   trans Linear bias
    out_proto: (num_users, P, D) f32 prototype memory
    returns:   (N, 1) f32 scores
    """
    n, d = x.shape
    num_users, p, _ = out_proto.shape

    # ---- Kernel A: one-time prototype reduction, U_TILE users per step. ----
    u_tile = num_users if num_users <= 128 else 128
    m = pl.pallas_call(
        _proto_reduce_kernel,
        out_shape=jax.ShapeDtypeStruct((num_users, d), jnp.float32),
        grid_spec=pltpu.PrefetchScalarGridSpec(
            num_scalar_prefetch=0,
            grid=(pl.cdiv(num_users, u_tile),),
            in_specs=[pl.BlockSpec((u_tile, p, d), lambda u: (u, 0, 0))],
            out_specs=pl.BlockSpec((u_tile, d), lambda u: (u, 0)),
        ),
        compiler_params=pltpu.CompilerParams(
            dimension_semantics=("parallel",)),
    )(out_proto)

    # ---- Kernel B: batched scoring, NB samples (lanes) per grid step. ----
    if nb is None:
        nb = _pick_nb(n)
    n_pad = pl.cdiv(n, nb) * nb
    if n < nb:
        # Tiny batch: pad x up to a single full tile (negligible at this size).
        x = jnp.pad(x, ((0, nb - n), (0, 0)))
    # For n >= nb we deliberately do NOT pad (or transpose) x in the wrapper:
    # Pallas handles the partial trailing block, so x is streamed exactly once.
    u_pad = jnp.pad(uidx.astype(jnp.int32), (0, n_pad - n)).reshape(1, n_pad)
    w_mxu = w.astype(mxu_dtype)    # resident; bf16 halves VMEM + doubles MXU rate
    b_col = bias.astype(jnp.float32).reshape(d, 1)

    if gather == "auto":
        gather = "onehot" if num_users <= 512 else "streamed"

    common_specs = [
        pl.BlockSpec((nb, d), lambda i: (i, 0)),            # x tile (row-major)
        pl.BlockSpec((d, d), lambda i: (0, 0)),             # W (VMEM-resident)
        pl.BlockSpec((d, 1), lambda i: (0, 0)),             # bias column (resident)
    ]
    # TODO(synk): for production-scale D on v7x (64 MiB VMEM), tile W along K
    # with an "arbitrary" reduction axis + f32 VMEM accumulator, single-buffer
    # the constant-index resident specs and raise vmem_limit_bytes; and in a
    # real model feed x already in bf16 so the streamed tiles are half-width.
    if gather == "onehot":
        kernel = _score_kernel_onehot
        in_specs = common_specs + [
            pl.BlockSpec((1, nb), lambda i: (0, i)),            # uidx tile
            pl.BlockSpec((num_users, d), lambda i: (0, 0)),     # M (VMEM-resident)
        ]
        args = (x, w_mxu, b_col, u_pad, m)
    else:
        # XLA gathers the per-sample anchors once; already lane-major (D, N_pad)
        # so the kernel streams them directly in the (D, NB) orientation.
        anchors_t = jnp.take(m.T, u_pad[0], axis=1)             # (D, n_pad) f32
        kernel = _score_kernel_streamed
        in_specs = common_specs + [
            pl.BlockSpec((d, nb), lambda i: (0, i)),            # M[uidx] tile
        ]
        args = (x, w_mxu, b_col, anchors_t)

    out = pl.pallas_call(
        kernel,
        out_shape=jax.ShapeDtypeStruct((1, n_pad), jnp.float32),
        grid_spec=pltpu.PrefetchScalarGridSpec(
            num_scalar_prefetch=0,
            grid=(n_pad // nb,),
            in_specs=in_specs,
            out_specs=pl.BlockSpec((1, nb), lambda i: (0, i)),  # lane-dense scores
        ),
        compiler_params=pltpu.CompilerParams(
            dimension_semantics=("parallel",)),
    )(*args)

    return out[0, :n].reshape(n, 1)


def user_memory_reference(uidx, x, w, bias, out_proto):
    """Pure-JAX reference mirroring the PyTorch forward."""
    anchors = out_proto[uidx]                                            # (N, P, D)
    h = x @ w.T + bias                                                   # (N, D)
    z = h / jnp.maximum(jnp.linalg.norm(h, axis=-1, keepdims=True), 1e-12)
    a_hat = anchors / jnp.maximum(
        jnp.linalg.norm(anchors, axis=-1, keepdims=True), 1e-12)
    cos_sim = jnp.einsum("nd,npd->np", z, a_hat)
    return cos_sim.sum(axis=-1, keepdims=True)                           # (N, 1)


def _make_inputs(key, num_users, embd_dim, num_proto, batch):
    k_proto, k_w, k_b, k_x, k_idx = jax.random.split(key, 5)
    # Deterministic parameter init matching UserMemory.init():
    scale = math.sqrt(3.0 / embd_dim)
    out_proto = jax.random.uniform(
        k_proto, (num_users, num_proto, embd_dim), jnp.float32, -scale, scale)
    w = jax.random.normal(k_w, (embd_dim, embd_dim), jnp.float32) * math.sqrt(2.0 / embd_dim)
    bound = 1.0 / math.sqrt(embd_dim)
    bias = jax.random.uniform(k_b, (embd_dim,), jnp.float32, -bound, bound)
    x = jax.random.normal(k_x, (batch, embd_dim), jnp.float32)
    uidx = jax.random.randint(k_idx, (batch,), 0, num_users, jnp.int32)
    return uidx, x, w, bias, out_proto


if __name__ == "__main__":
    key = jax.random.PRNGKey(0)
    k1, k2 = jax.random.split(key)

    # (self.users is unused in forward.)
    # TODO(synk): reg() (batched logdet regularizer), com_memory=True and
    # attn_map=True paths are not part of this forward and are not implemented.

    # Case 1: small module -> resident-M one-hot gather path, single tile.
    args1 = _make_inputs(k1, num_users=16, embd_dim=32, num_proto=8, batch=8)
    ref1 = user_memory_reference(*args1)
    exact1 = jax.block_until_ready(
        user_memory_forward(*args1, mxu_dtype=jnp.float32))      # exact-math check
    fast1 = jax.block_until_ready(user_memory_forward(*args1))   # bf16 MXU path
    assert exact1.shape == (8, 1), exact1.shape
    assert jnp.allclose(exact1, ref1, rtol=1e-4, atol=1e-4), (exact1, ref1)
    assert jnp.allclose(fast1, ref1, rtol=5e-2, atol=5e-2), (fast1, ref1)

    # Case 2: larger user table -> streamed-anchor path, multi-tile grid with a
    # partial trailing x block (no wrapper pad/transpose of x).
    args2 = _make_inputs(k2, num_users=600, embd_dim=32, num_proto=8, batch=300)
    ref2 = user_memory_reference(*args2)
    exact2 = jax.block_until_ready(
        user_memory_forward(*args2, mxu_dtype=jnp.float32, gather="streamed"))
    fast2 = jax.block_until_ready(
        user_memory_forward(*args2, gather="streamed"))
    assert exact2.shape == (300, 1), exact2.shape
    assert jnp.allclose(exact2, ref2, rtol=1e-4, atol=1e-4), (exact2, ref2)
    assert jnp.allclose(fast2, ref2, rtol=5e-2, atol=5e-2), (fast2, ref2)

    print("KERNEL_OK")
</pallas_src>

<mosaic_0001>
module attributes {stable_mosaic.version = 11 : i64} {
  func.func @_proto_reduce_kernel(%arg0: i32, %arg1: memref<16x8x32xf32, #tpu.memory_space<vmem>>, %arg2: memref<16x32xf32, #tpu.memory_space<vmem>>) attributes {dimension_semantics = [#tpu.dimension_semantics<parallel>], iteration_bounds = array<i64: 1>, scalar_prefetch = 0 : i64, scratch_operands = 0 : i64, tpu.core_type = #tpu.core_type<tc>, window_params = [{transform_indices = @transform_0, window_bounds = array<i64: 16, 8, 32>}, {transform_indices = @transform_1, window_bounds = array<i64: 16, 32>}]} {
    %c0 = arith.constant 0 : index
    %c0_0 = arith.constant 0 : index
    %c0_1 = arith.constant 0 : index
    %0 = vector.load %arg1[%c0, %c0_0, %c0_1] : memref<16x8x32xf32, #tpu.memory_space<vmem>>, vector<16x8x32xf32>
    %1 = arith.mulf %0, %0 : vector<16x8x32xf32>
    %cst = arith.constant dense<0.000000e+00> : vector<16x8xf32>
    %2 = vector.multi_reduction <add>, %1, %cst [2] : vector<16x8x32xf32> to vector<16x8xf32>
    %3 = vector.shape_cast %2 : vector<16x8xf32> to vector<16x8x1xf32>
    %cst_2 = arith.constant 1.000000e-24 : f32
    %4 = vector.broadcast %cst_2 : f32 to vector<16x8x1xf32>
    %5 = arith.maximumf %3, %4 : vector<16x8x1xf32>
    %6 = math.rsqrt %5 : vector<16x8x1xf32>
    %7 = vector.broadcast %6 : vector<16x8x1xf32> to vector<16x8x32xf32>
    %8 = arith.mulf %0, %7 : vector<16x8x32xf32>
    %cst_3 = arith.constant dense<0.000000e+00> : vector<16x32xf32>
    %9 = vector.multi_reduction <add>, %8, %cst_3 [1] : vector<16x8x32xf32> to vector<16x32xf32>
    %c0_4 = arith.constant 0 : index
    %c0_5 = arith.constant 0 : index
    %10 = vector.load %arg2[%c0_4, %c0_5] : memref<16x32xf32, #tpu.memory_space<vmem>>, vector<16x32xf32>
    tpu.vector_store %arg2[%c0_4, %c0_5], %9 {strides = array<i32>} : memref<16x32xf32, #tpu.memory_space<vmem>>, vector<16x32xf32>,
    return
  }
  func.func @transform_0(%arg0: i32) -> (i32, i32, i32) {
    %c0_i32 = arith.constant 0 : i32
    %c0_i32_0 = arith.constant 0 : i32
    %c0_i32_1 = arith.constant 0 : i32
    return %arg0, %c0_i32, %c0_i32_0 : i32, i32, i32
  }
  func.func @transform_1(%arg0: i32) -> (i32, i32) {
    %c0_i32 = arith.constant 0 : i32
    %c0_i32_0 = arith.constant 0 : i32
    return %arg0, %c0_i32 : i32, i32
  }
}

</mosaic_0001>

<bundles_post_ra>
// kernel: tpu_custom_call.1
= control target key start
LH: loop header
LB: loop body
LE: loop exit
PB: predicated region body
PF: predicated region fallthrough
CT: control target
= control target key end

     0   :  { %6 = vsyncpa [#allocation3], 0  ;;  %s576_s0 = inlined_call_operand.hbm [shape: f32[16,8,32], index: 0, kind: input, shape index: {}]   ;;  %s577_s1 = inlined_call_operand.hbm [shape: f32[16,32], index: 1, kind: output, shape index: {}]  }
   0x1   :  { %7 = vsyncpa [#allocation4], 0  ;;  %s406_s6 = smov [#allocation2]   ;;  %s358_s10 = scalar_lea.hbm %s576_s0, 2048 }
   0x2   :  { %s13_s7 = sshll.u32 %s406_s6, 4  ;;  %p359_p0 = scmp.ne.s32.totalorder %s576_s0, %s358_s10  ;;  %s14_s7 = int_to_ptr.vmem [resolvable:$true] %s13_s7 }
   0x3   :  { %p362_p1 = scmp.lt.u32.totalorder %s358_s10, %s576_s0 }
   0x5   :  { %p364_p2 = pnand %p362_p1, %p359_p0 }
   0x7   :  { %367 = shalt.err (!%p364_p2)
}
   0x8   :  { %s368_s15 = scalar_lea.vmem %s14_s7, 2048  ;;  %p373_p4 = scmp.lt.s32.totalorder %s14_s7, %s14_s7 }
   0x9   :  { %p369_p3 = scmp.ne.s32.totalorder %s14_s7, %s368_s15  ;;  %p374_p5 = scmp.lt.s32.totalorder %s368_s15, %s368_s15 }
   0xb   :  { %p375_p6 = por %p374_p5, %p373_p4 }
   0xd   :  { %p376_p7 = pnand %p375_p6, %p369_p3 }
   0xf   :  { %379 = shalt.err (!%p376_p7)
}
  0x10   :  { %s407_s16 = smov 128   ;;  %s408_s17 = smov 8  }
  0x11   :  { %19 = dma.hbm_to_vmem [thread:$0]  %s576_s0, 2048, %s14_s7, [#allocation3], %s407_s16, %s407_s16, %s408_s17  }
  0x12   :  { %402 = dma.done.wait [#allocation3], 2048  }
  0x13   :  { %403 = vsyncadd [#allocation3], 4294965248  ;;  %v435_v0 = vld [vmem:[#allocation2 + $0x40] sm:$0xff]  ;;  %vm55_vm0 = vcmask 261120   ;;  %v439_v2 = vld [vmem:[#allocation2 + $0x48] sm:$0xff]  ;;  %vm280_vm1 = vcmask 1041409  }
  0x14   :  { %v437_v1 = vld [vmem:[#allocation2] sm:$0xff]  ;;  %v47_v3 = vmul.f32 %v435_v0, %v435_v0  ;;  %v48_v5 = vmul.f32 %v439_v2, %v439_v2  ;;  %v447_v6 = vld [vmem:[#allocation2 + $0x8] sm:$0xff]  ;;  %v451_v8 = vld [vmem:[#allocation2 + $0x50] sm:$0xff]  ;;  %vm282_vm2 = vcmask 1042434   ;;  %vm284_vm3 = vcmask 1043459   ;;  %s409_s0 = smov [#allocation5]  }
  0x15   :  { %v39_v4 = vmul.f32 %v437_v1, %v437_v1  ;;  %v40_v7 = vmul.f32 %v447_v6, %v447_v6  ;;  %v453_v9 = vld [vmem:[#allocation2 + $0x10] sm:$0xff]  ;;  %v49_v14 = vmul.f32 %v451_v8, %v451_v8  ;;  %v463_v16 = vld [vmem:[#allocation2 + $0x58] sm:$0xff]  ;;  %v473_v22 = vld [vmem:[#allocation2 + $0x60] sm:$0xff]  ;;  %vm286_vm4 = vcmask 1044484   ;;  %s310_s20 = sshll.u32 %s409_s0, 4  ;;  %s311_s20 = int_to_ptr.vmem [resolvable:$true] %s310_s20 }
  0x16   :  { %v80_v10 = vsel %vm55_vm0, %v47_v3, 0.0  ;;  %v83_v12 = vsel %vm55_vm0, %v48_v5, 0.0  ;;  %v41_v15 = vmul.f32 %v453_v9, %v453_v9  ;;  %v465_v17 = vld [vmem:[#allocation2 + $0x18] sm:$0xff]  ;;  %v50_v20 = vmul.f32 %v463_v16, %v463_v16  ;;  %v475_v23 = vld [vmem:[#allocation2 + $0x20] sm:$0xff]  ;;  %v483_v28 = vld [vmem:[#allocation2 + $0x68] sm:$0xff]  ;;  %s380_s21 = scalar_lea.vmem %s311_s20, 256  ;;  %p385_p9 = scmp.lt.s32.totalorder %s311_s20, %s311_s20 }
  0x17   :  { %v56_v11 = vsel %vm55_vm0, %v39_v4, 0.0  ;;  %81 = vadd.xlane.f32.xlu1 %v80_v10  ;;  %v59_v13 = vsel %vm55_vm0, %v40_v7, 0.0  ;;  %v86_v18 = vsel %vm55_vm0, %v49_v14, 0.0  ;;  %v42_v21 = vmul.f32 %v465_v17, %v465_v17  ;;  %v485_v29 = vld [vmem:[#allocation2 + $0x28] sm:$0xff]  ;;  %v493_v34 = vld [vmem:[#allocation2 + $0x70] sm:$0xff]  ;;  %v503_v40 = vld [vmem:[#allocation2 + $0x78] sm:$0xff]  ;;  %p381_p8 = scmp.ne.s32.totalorder %s311_s20, %s380_s21  ;;  %p386_p10 = scmp.lt.s32.totalorder %s380_s21, %s380_s21 }
  0x18   :  { %57 = vadd.xlane.f32.xlu0 %v56_v11  ;;  %v62_v19 = vsel %vm55_vm0, %v41_v15, 0.0  ;;  %v89_v24 = vsel %vm55_vm0, %v50_v20, 0.0  ;;  %v51_v26 = vmul.f32 %v473_v22, %v473_v22  ;;  %v43_v27 = vmul.f32 %v475_v23, %v475_v23  ;;  %v495_v35 = vld [vmem:[#allocation2 + $0x30] sm:$0xff]  ;;  %v505_v41 = vld [vmem:[#allocation2 + $0x38] sm:$0xff] }
  0x19   :  { %v65_v25 = vsel %vm55_vm0, %v42_v21, 0.0  ;;  %v52_v32 = vmul.f32 %v483_v28, %v483_v28  ;;  %v44_v33 = vmul.f32 %v485_v29, %v485_v29  ;;  %v53_v38 = vmul.f32 %v493_v34, %v493_v34  ;;  %p387_p11 = por %p386_p10, %p385_p9 }
  0x1a   :  { %v92_v30 = vsel %vm55_vm0, %v51_v26, 0.0  ;;  %v68_v31 = vsel %vm55_vm0, %v43_v27, 0.0  ;;  %v45_v39 = vmul.f32 %v495_v35, %v495_v35  ;;  %v54_v44 = vmul.f32 %v503_v40, %v503_v40 }
  0x1b   :  { %84 = vadd.xlane.f32.xlu1 %v83_v12  ;;  %v95_v36 = vsel %vm55_vm0, %v52_v32, 0.0  ;;  %v71_v37 = vsel %vm55_vm0, %v44_v33, 0.0  ;;  %v98_v42 = vsel %vm55_vm0, %v53_v38, 0.0  ;;  %v46_v45 = vmul.f32 %v505_v41, %v505_v41  ;;  %p388_p12 = pnand %p387_p11, %p381_p8 }
  0x1c   :  { %60 = vadd.xlane.f32.xlu0 %v59_v13  ;;  %v74_v43 = vsel %vm55_vm0, %v45_v39, 0.0  ;;  %v101_v46 = vsel %vm55_vm0, %v54_v44, 0.0  ;;  %vm288_vm5 = vcmask 1045509   ;;  %vm290_vm6 = vcmask 1046534  }
  0x1d   :  { %v77_v47 = vsel %vm55_vm0, %v46_v45, 0.0  ;;  %vm292_vm7 = vcmask 1047559  }
  0x1f   :  { %87 = vadd.xlane.f32.xlu1 %v86_v18 }
  0x20   :  { %63 = vadd.xlane.f32.xlu0 %v62_v19 }
  0x23   :  { %90 = vadd.xlane.f32.xlu1 %v89_v24 }
  0x24   :  { %66 = vadd.xlane.f32.xlu0 %v65_v25 }
  0x27   :  { %93 = vadd.xlane.f32.xlu1 %v92_v30 }
  0x28   :  { %69 = vadd.xlane.f32.xlu0 %v68_v31 }
  0x2b   :  { %96 = vadd.xlane.f32.xlu1 %v95_v36 }
  0x2c   :  { %72 = vadd.xlane.f32.xlu0 %v71_v37 }
  0x2f   :  { %99 = vadd.xlane.f32.xlu1 %v98_v42 }
  0x30   :  { %75 = vadd.xlane.f32.xlu0 %v74_v43 }
  0x33   :  { %102 = vadd.xlane.f32.xlu1 %v101_v46 }
  0x34   :  { %78 = vadd.xlane.f32.xlu0 %v77_v47 }
  0xa4   :  { %v82_v48 = vpop.xlane.xlu1 %81 }
  0xa5   :  { %v58_v49 = vpop.xlane.xlu0 %57  ;;  %v112_v50 = vmax.f32 %v82_v48, 1e-24 }
  0xa6   :  { %v104_v51 = vmax.f32 %v58_v49, 1e-24 }
  0xa7   :  { %326 = vrsqrt.f32 %v112_v50 }
  0xa8   :  { %v85_v52 = vpop.xlane.xlu1 %84  ;;  %328 = vrsqrt.f32 %v104_v51 }
  0xa9   :  { %v61_v53 = vpop.xlane.xlu0 %60  ;;  %v113_v54 = vmax.f32 %v85_v52, 1e-24 }
  0xaa   :  { %v105_v55 = vmax.f32 %v61_v53, 1e-24 }
  0xab   :  { %330 = vrsqrt.f32 %v113_v54 }
  0xac   :  { %v88_v56 = vpop.xlane.xlu1 %87  ;;  %332 = vrsqrt.f32 %v105_v55 }
  0xad   :  { %v64_v57 = vpop.xlane.xlu0 %63  ;;  %v114_v58 = vmax.f32 %v88_v56, 1e-24 }
  0xae   :  { %v106_v59 = vmax.f32 %v64_v57, 1e-24 }
  0xaf   :  { %334 = vrsqrt.f32 %v114_v58 }
  0xb0   :  { %v91_v60 = vpop.xlane.xlu1 %90  ;;  %336 = vrsqrt.f32 %v106_v59 }
  0xb1   :  { %v67_v61 = vpop.xlane.xlu0 %66  ;;  %v115_v62 = vmax.f32 %v91_v60, 1e-24  ;;  %v327_v5 = vpop.eup %326 }
  0xb2   :  { %v107_v63 = vmax.f32 %v67_v61, 1e-24  ;;  %v329_v10 = vpop.eup %328  ;;  %v144_v20 = vmul.f32 %v327_v5, %v435_v0 }
  0xb3   :  { %338 = vrsqrt.f32 %v115_v62  ;;  %v136_v21 = vmul.f32 %v329_v10, %v437_v1 }
  0xb4   :  { %v94_v3 = vpop.xlane.xlu1 %93  ;;  %340 = vrsqrt.f32 %v107_v63  ;;  %v208_v31 = vsel %vm55_vm0, %v144_v20, 0.0 }
  0xb5   :  { %v70_v4 = vpop.xlane.xlu0 %69  ;;  %v116_v7 = vmax.f32 %v94_v3, 1e-24  ;;  %v331_v12 = vpop.eup %330  ;;  %v152_v32 = vsel %vm55_vm0, %v136_v21, 0.0  ;;  %v209_v37 = vrot.slane %v208_v31, 4 }
  0xb6   :  { %v108_v11 = vmax.f32 %v70_v4, 1e-24  ;;  %v333_v13 = vpop.eup %332  ;;  %v145_v25 = vmul.f32 %v331_v12, %v439_v2 }
  0xb7   :  { %342 = vrsqrt.f32 %v116_v7  ;;  %v137_v26 = vmul.f32 %v333_v13, %v447_v6  ;;  %v153_v6 = vrot.slane %v152_v32, 4  ;;  %v210_v50 = vadd.f32 %v209_v37, %v208_v31 }
  0xb8   :  { %v97_v14 = vpop.xlane.xlu1 %96  ;;  %344 = vrsqrt.f32 %v108_v11  ;;  %v215_v33 = vsel %vm55_vm0, %v145_v25, 0.0 }
  0xb9   :  { %v73_v15 = vpop.xlane.xlu0 %72  ;;  %v335_v18 = vpop.eup %334  ;;  %v117_v19 = vmax.f32 %v97_v14, 1e-24  ;;  %v159_v0 = vsel %vm55_vm0, %v137_v26, 0.0  ;;  %v216_v39 = vrot.slane %v215_v33, 4  ;;  %v211_v60 = vrot.slane %v210_v50, 2 }
  0xba   :  { %v109_v24 = vmax.f32 %v73_v15, 1e-24  ;;  %v337_v27 = vpop.eup %336  ;;  %v146_v30 = vmul.f32 %v335_v18, %v451_v8  ;;  %v160_v42 = vrot.slane %v159_v0, 4 }
  0xbb   :  { %346 = vrsqrt.f32 %v117_v19  ;;  %v138_v1 = vmul.f32 %v337_v27, %v453_v9  ;;  %v154_v9 = vadd.f32 %v153_v6, %v152_v32  ;;  %v217_v53 = vadd.f32 %v216_v39, %v215_v33 }
  0xbc   :  { %348 = vrsqrt.f32 %v109_v24  ;;  %v222_v36 = vsel %vm55_vm0, %v146_v30, 0.0  ;;  %v100_v47 = vpop.xlane.xlu1 %99  ;;  %v161_v54 = vadd.f32 %v160_v42, %v159_v0  ;;  %v212_v19 = vadd.f32 %v211_v60, %v210_v50 }
  0xbd   :  { %v339_v2 = vpop.eup %338  ;;  %v223_v43 = vrot.slane %v222_v36, 4  ;;  %v166_v44 = vsel %vm55_vm0, %v138_v1, 0.0  ;;  %v76_v48 = vpop.xlane.xlu0 %75  ;;  %v155_v61 = vrot.slane %v154_v9, 2  ;;  %v118_v5 = vmax.f32 %v100_v47, 1e-24 }
  0xbe   :  { %v341_v38 = vpop.eup %340  ;;  %v147_v46 = vmul.f32 %v339_v2, %v463_v16  ;;  %v167_v55 = vrot.slane %v166_v44, 4  ;;  %v162_v3 = vrot.slane %v161_v54, 2  ;;  %v110_v13 = vmax.f32 %v76_v48, 1e-24 }
  0xbf   :  { %v139_v51 = vmul.f32 %v341_v38, %v465_v17  ;;  %v224_v56 = vadd.f32 %v223_v43, %v222_v36  ;;  %v218_v17 = vrot.slane %v217_v53, 2  ;;  %350 = vrsqrt.f32 %v118_v5 }
  0xc0   :  { %v229_v58 = vsel %vm55_vm0, %v147_v46, 0.0  ;;  %v168_v4 = vadd.f32 %v167_v55, %v166_v44  ;;  %v103_v7 = vpop.xlane.xlu1 %102  ;;  %352 = vrsqrt.f32 %v110_v13  ;;  %v156_v20 = vadd.f32 %v155_v61, %v154_v9 }
  0xc1   :  { %v343_v8 = vpop.eup %342  ;;  %v173_v62 = vsel %vm55_vm0, %v139_v51, 0.0  ;;  %v79_v10 = vpop.xlane.xlu0 %78  ;;  %v225_v11 = vrot.slane %v224_v56, 2  ;;  %v219_v24 = vadd.f32 %v218_v17, %v217_v53  ;;  %v163_v27 = vadd.f32 %v162_v3, %v161_v54 }
  0xc2   :  { %v345_v45 = vpop.eup %344  ;;  %v148_v57 = vmul.f32 %v343_v8, %v473_v22  ;;  %v230_v22 = vrot.slane %v229_v58, 4  ;;  %v111_v18 = vmax.f32 %v79_v10, 1e-24  ;;  %v169_v33 = vrot.slane %v168_v4, 2 }
  0xc3   :  { %v140_v59 = vmul.f32 %v345_v45, %v475_v23  ;;  %v174_v23 = vrot.slane %v173_v62, 4  ;;  %v226_v32 = vadd.f32 %v225_v11, %v224_v56  ;;  %v213_v1 = vrot.slane %v212_v19, 1 }
  0xc4   :  { %v236_v12 = vsel %vm55_vm0, %v148_v57, 0.0  ;;  %v231_v30 = vadd.f32 %v230_v22, %v229_v58  ;;  %v157_v36 = vrot.slane %v156_v20, 1  ;;  %v220_v37 = vrot.slane %v219_v24, 1 }
  0xc5   :  { %v347_v49 = vpop.eup %346  ;;  %v237_v21 = vrot.slane %v236_v12, 4  ;;  %v175_v0 = vadd.f32 %v174_v23, %v173_v62  ;;  %v164_v39 = vrot.slane %v163_v27, 1  ;;  %v227_v43 = vrot.slane %v226_v32, 1 }
  0xc6   :  { %v349_v52 = vpop.eup %348  ;;  %v149_v16 = vmul.f32 %v347_v49, %v483_v28  ;;  %v180_v28 = vsel %vm55_vm0, %v140_v59, 0.0  ;;  %v232_v42 = vrot.slane %v231_v30, 2  ;;  %v170_v44 = vadd.f32 %v169_v33, %v168_v4 }
  0xc7   :  { %v141_v63 = vmul.f32 %v349_v52, %v485_v29  ;;  %v119_v29 = vmax.f32 %v103_v7, 1e-24  ;;  %v181_v25 = vrot.slane %v180_v28, 4  ;;  %v238_v2 = vadd.f32 %v237_v21, %v236_v12 }
  0xc8   :  { %v243_v14 = vsel %vm55_vm0, %v149_v16, 0.0  ;;  %v176_v45 = vrot.slane %v175_v0, 2  ;;  %v214_v47 = vadd.f32 %v213_v1, %v212_v19  ;;  %v158_v48 = vadd.f32 %v157_v36, %v156_v20 }
  0xc9   :  { %v187_v15 = vsel %vm55_vm0, %v141_v63, 0.0  ;;  %v244_v26 = vrot.slane %v243_v14, 4  ;;  %354 = vrsqrt.f32 %v119_v29  ;;  %v182_v6 = vadd.f32 %v181_v25, %v180_v28  ;;  %v351_v46 = vpop.eup %350 }
  0xca   :  { %v188_v31 = vrot.slane %v187_v15, 4  ;;  %356 = vrsqrt.f32 %v111_v18  ;;  %v239_v49 = vrot.slane %v238_v2, 2  ;;  %v353_v50 = vpop.eup %352  ;;  %v221_v9 = vadd.f32 %v220_v37, %v219_v24 }
  0xcb   :  { %v245_v38 = vadd.f32 %v244_v26, %v243_v14  ;;  %v183_v51 = vrot.slane %v182_v6, 2  ;;  %v150_v53 = vmul.f32 %v351_v46, %v493_v34  ;;  %v165_v54 = vadd.f32 %v164_v39, %v163_v27 }
  0xcc   :  { %v189_v8 = vadd.f32 %v188_v31, %v187_v15  ;;  %v233_v55 = vadd.f32 %v232_v42, %v231_v30  ;;  %v142_v57 = vmul.f32 %v353_v50, %v495_v35  ;;  %v228_v59 = vadd.f32 %v227_v43, %v226_v32 }
  0xcd   :  { %v246_v52 = vrot.slane %v245_v38, 2  ;;  %v171_v16 = vrot.slane %v170_v44, 1  ;;  %v177_v60 = vadd.f32 %v176_v45, %v175_v0  ;;  %v250_v61 = vsel %vm55_vm0, %v150_v53, 0.0 }
  0xce   :  { %v190_v56 = vrot.slane %v189_v8, 2  ;;  %v240_v63 = vadd.f32 %v239_v49, %v238_v2  ;;  %v251_v17 = vrot.slane %v250_v61, 4  ;;  %v194_v3 = vsel %vm55_vm0, %v142_v57, 0.0 }
  0xcf   :  { %v184_v34 = vadd.f32 %v183_v51, %v182_v6  ;;  %v195_v5 = vrot.slane %v194_v3, 4  ;;  %v247_v35 = vadd.f32 %v246_v52, %v245_v38  ;;  %v234_v10 = vrot.slane %v233_v55, 1 }
  0xd0   :  { %v252_v11 = vadd.f32 %v251_v17, %v250_v61  ;;  %v191_v12 = vadd.f32 %v190_v56, %v189_v8  ;;  %v178_v13 = vrot.slane %v177_v60, 1  ;;  %v241_v29 = vrot.slane %v240_v63, 1 }
  0xd1   :  { %v196_v23 = vadd.f32 %v195_v5, %v194_v3  ;;  %v185_v19 = vrot.slane %v184_v34, 1  ;;  %v248_v20 = vrot.slane %v247_v35, 1  ;;  %v235_v24 = vadd.f32 %v234_v10, %v233_v55 }
  0xd2   :  { %v253_v18 = vrot.slane %v252_v11, 2  ;;  %v192_v25 = vrot.slane %v191_v12, 1  ;;  %v179_v30 = vadd.f32 %v178_v13, %v177_v60  ;;  %v281_v33 = vsel %vm280_vm1, %v165_v54, %v158_v48 }
  0xd3   :  { %v355_v58 = vpop.eup %354  ;;  %v242_v1 = vadd.f32 %v241_v29, %v240_v63  ;;  %v294_v2 = vsel %vm280_vm1, %v221_v9, %v214_v47  ;;  %v186_v37 = vadd.f32 %v185_v19, %v184_v34  ;;  %v249_v38 = vadd.f32 %v248_v20, %v247_v35 }
  0xd4   :  { %v357_v62 = vpop.eup %356  ;;  %v151_v4 = vmul.f32 %v355_v58, %v503_v40  ;;  %v172_v40 = vadd.f32 %v171_v16, %v170_v44  ;;  %v254_v27 = vadd.f32 %v253_v18, %v252_v11  ;;  %v193_v42 = vadd.f32 %v192_v25, %v191_v12 }
  0xd5   :  { %v143_v7 = vmul.f32 %v357_v62, %v505_v41  ;;  %v197_v41 = vrot.slane %v196_v23, 2  ;;  %v295_v44 = vsel %vm282_vm2, %v228_v59, %v294_v2 }
  0xd6   :  { %v257_v22 = vsel %vm55_vm0, %v151_v4, 0.0  ;;  %v255_v36 = vrot.slane %v254_v27, 1  ;;  %v283_v49 = vsel %vm282_vm2, %v172_v40, %v281_v33  ;;  %v296_v48 = vsel %vm284_vm3, %v235_v24, %v295_v44 }
  0xd7   :  { %v258_v28 = vrot.slane %v257_v22, 4  ;;  %v201_v14 = vsel %vm55_vm0, %v143_v7, 0.0  ;;  %v198_v31 = vadd.f32 %v197_v41, %v196_v23  ;;  %v285_v51 = vsel %vm284_vm3, %v179_v30, %v283_v49 }
  0xd8   :  { %v202_v15 = vrot.slane %v201_v14, 4  ;;  %v256_v43 = vadd.f32 %v255_v36, %v254_v27  ;;  %v297_v47 = vsel %vm286_vm4, %v242_v1, %v296_v48  ;;  %v287_v52 = vsel %vm286_vm4, %v186_v37, %v285_v51 }
  0xd9   :  { %v259_v21 = vadd.f32 %v258_v28, %v257_v22  ;;  %v199_v6 = vrot.slane %v198_v31, 1  ;;  %v298_v53 = vsel %vm288_vm5, %v249_v38, %v297_v47  ;;  %v289_v55 = vsel %vm288_vm5, %v193_v42, %v287_v52 }
  0xda   :  { %v203_v26 = vadd.f32 %v202_v15, %v201_v14  ;;  %v299_v56 = vsel %vm290_vm6, %v256_v43, %v298_v53 }
  0xdb   :  { %v260_v32 = vrot.slane %v259_v21, 2  ;;  %v200_v45 = vadd.f32 %v199_v6, %v198_v31 }
  0xdc   :  { %v204_v0 = vrot.slane %v203_v26, 2 }
  0xdd   :  { %v261_v39 = vadd.f32 %v260_v32, %v259_v21  ;;  %v291_v57 = vsel %vm290_vm6, %v200_v45, %v289_v55 }
  0xde   :  { %v205_v8 = vadd.f32 %v204_v0, %v203_v26 }
  0xdf   :  { %v262_v46 = vrot.slane %v261_v39, 1 }
  0xe0   :  { %v206_v50 = vrot.slane %v205_v8, 1 }
  0xe1   :  { %v263_v9 = vadd.f32 %v262_v46, %v261_v39 }
  0xe2   :  { %v207_v54 = vadd.f32 %v206_v50, %v205_v8 }
  0xe3   :  { %v300_v58 = vsel %vm292_vm7, %v263_v9, %v299_v56 }
  0xe4   :  { %v293_v59 = vsel %vm292_vm7, %v207_v54, %v291_v57  ;;  %304 = vst.msk [vmem:[#allocation5 + $0x8] sm:$0xff] %vm55_vm0, %v300_v58 }
  0xe5   :  { %303 = vst.msk [vmem:[#allocation5] sm:$0xff] %vm55_vm0, %v293_v59 }
  0xe6   :  { %391 = shalt.err (!%p388_p12)
}
  0xe7   :  { %s392_s24 = scalar_lea.hbm %s577_s1, 256 }
  0xe8   :  { %p393_p13 = scmp.ne.s32.totalorder %s577_s1, %s392_s24  ;;  %p396_p0 = scmp.lt.u32.totalorder %s392_s24, %s577_s1 }
  0xea   :  { %p398_p1 = pnand %p396_p0, %p393_p13 }
  0xec   :  { %401 = shalt.err (!%p398_p1)
}
  0xed   :  { %316 = dma.vmem_to_hbm [thread:$0]  %s311_s20, 256, %s577_s1, [#allocation4], %s407_s16, %s407_s16, %s408_s17  }
  0xee   :  { %404 = dma.done.wait [#allocation4], 256  }
  0xef   :  { %405 = vsyncadd [#allocation4], 4294967040 }
  0xf0   :  { %320 = vsyncpa [#allocation3], 1 }
  0xf1   :  { %321 = vsyncpa [#allocation4], 1 }

</bundles_post_ra>
